<compile_context>
chip_gen: v5e
topology: v5e:2x2
jax: 0.10.0
libtpu: 0.0.40
codegen_flags: <defaults>
</compile_context>

<pallas_src>
import jax
import jax.numpy as jnp
from jax.experimental import pallas as pl
from jax.experimental.pallas import tpu as pltpu

EPS = 1e-20          # torch.nn.CosineSimilarity(dim=1, eps=1e-20)
LOSS_LAMBDA = 5.0    # module default


def _pick_hw_block(HW, C, max_block_bytes=1 << 20):
    """Largest HW block that divides HW, is 128-lane aligned when it is a strict
    sub-block, and keeps a (C, HW_BLK) f32 slab under max_block_bytes."""
    max_elems = max(128, max_block_bytes // (4 * C))
    if HW <= max_elems or HW % 128 != 0:
        # Block equal to the full dim is always a legal BlockSpec.
        # TODO(synk): very large non-128-aligned H*W falls back to one full slab per step.
        return HW
    blk = HW
    while blk > max_elems and blk % 2 == 0 and (blk // 2) % 128 == 0:
        blk //= 2
    return blk


def _make_kernel(C, HW_BLK):
    """Per-(batch, spatial-block) kernel: channel-dim cosine similarity + L1 partial sums."""

    def kernel(x_ref, y_ref, l1_ref, cos_ref):
        x = x_ref[0].astype(jnp.float32)   # (C, HW_BLK), lane-dense spatial axis
        y = y_ref[0].astype(jnp.float32)

        # Channel-dim (dim=1 in NCHW) reductions — small sublane reduce, VPU elementwise.
        dot = jnp.sum(x * y, axis=0, keepdims=True)    # (1, HW_BLK)
        nx = jnp.sum(x * x, axis=0, keepdims=True)
        ny = jnp.sum(y * y, axis=0, keepdims=True)

        # cos = <x,y> / max(||x||*||y||, eps); reciprocal on the EUP + one Newton step.
        denom = jnp.maximum(jnp.sqrt(nx * ny), EPS)
        inv = pl.reciprocal(denom, approx=True)
        inv = inv * (2.0 - denom * inv)                # Newton refinement -> f32 accuracy
        cos = dot * inv

        l1_part = jnp.sum(jnp.abs(x - y), keepdims=True)    # (1, 1)
        cos_part = jnp.sum(1.0 - cos, keepdims=True)         # (1, 1)

        # Independent per-step partial sums (no revisited output block -> parallel grid).
        l1_ref[...] = l1_part.reshape(1, 1, 1, 1)
        cos_ref[...] = cos_part.reshape(1, 1, 1, 1)

    return kernel


def expandnet_loss(x, y, loss_lambda=LOSS_LAMBDA):
    """mean(|x-y|) + loss_lambda * mean(1 - cosine_similarity(x, y, dim=1)), NCHW inputs."""
    N, C, H, W = x.shape
    HW = H * W
    xr = jnp.reshape(x, (N, C, HW))   # free: contiguous NCHW -> (N, C, H*W)
    yr = jnp.reshape(y, (N, C, HW))

    HW_BLK = _pick_hw_block(HW, C)
    G = HW // HW_BLK

    kernel = _make_kernel(C, HW_BLK)
    l1_parts, cos_parts = pl.pallas_call(
        kernel,
        out_shape=(
            jax.ShapeDtypeStruct((N, G, 1, 1), jnp.float32),
            jax.ShapeDtypeStruct((N, G, 1, 1), jnp.float32),
        ),
        grid_spec=pltpu.PrefetchScalarGridSpec(
            num_scalar_prefetch=0,
            grid=(N, G),
            in_specs=[
                pl.BlockSpec((1, C, HW_BLK), lambda n, g: (n, 0, g)),
                pl.BlockSpec((1, C, HW_BLK), lambda n, g: (n, 0, g)),
            ],
            out_specs=[
                pl.BlockSpec((1, 1, 1, 1), lambda n, g: (n, g, 0, 0)),
                pl.BlockSpec((1, 1, 1, 1), lambda n, g: (n, g, 0, 0)),
            ],
        ),
        compiler_params=pltpu.CompilerParams(
            dimension_semantics=("parallel", "parallel")
        ),
    )(xr, yr)

    l1 = jnp.sum(l1_parts) / (N * C * H * W)
    cosine_term = jnp.sum(cos_parts) / (N * H * W)
    return l1 + loss_lambda * cosine_term


def _ref_loss(x, y, loss_lambda=LOSS_LAMBDA):
    """Pure-JAX reference mirroring the PyTorch module."""
    xf = x.astype(jnp.float32)
    yf = y.astype(jnp.float32)
    dot = jnp.sum(xf * yf, axis=1)
    nx = jnp.sqrt(jnp.sum(xf * xf, axis=1))
    ny = jnp.sqrt(jnp.sum(yf * yf, axis=1))
    cos = dot / jnp.maximum(nx * ny, EPS)
    cosine_term = jnp.mean(1.0 - cos)
    l1 = jnp.mean(jnp.abs(xf - yf))
    return l1 + loss_lambda * cosine_term


if __name__ == "__main__":
    key = jax.random.PRNGKey(0)
    kx, ky = jax.random.split(key)
    x = jax.random.uniform(kx, (2, 4, 16, 16), dtype=jnp.float32)
    y = jax.random.uniform(ky, (2, 4, 16, 16), dtype=jnp.float32)

    loss = jax.block_until_ready(expandnet_loss(x, y))
    ref = jax.block_until_ready(_ref_loss(x, y))
    assert jnp.allclose(loss, ref, rtol=1e-4, atol=1e-5), (loss, ref)
    print("KERNEL_OK")
</pallas_src>

<mosaic_0001>
module attributes {stable_mosaic.version = 11 : i64} {
  func.func @kernel(%arg0: i32, %arg1: i32, %arg2: memref<1x4x256xf32, #tpu.memory_space<vmem>>, %arg3: memref<1x4x256xf32, #tpu.memory_space<vmem>>, %arg4: memref<1x1x1x1xf32, #tpu.memory_space<vmem>>, %arg5: memref<1x1x1x1xf32, #tpu.memory_space<vmem>>) attributes {dimension_semantics = [#tpu.dimension_semantics<parallel>, #tpu.dimension_semantics<parallel>], iteration_bounds = array<i64: 2, 1>, scalar_prefetch = 0 : i64, scratch_operands = 0 : i64, tpu.core_type = #tpu.core_type<tc>, window_params = [{transform_indices = @transform_0, window_bounds = array<i64: 1, 4, 256>}, {transform_indices = @transform_1, window_bounds = array<i64: 1, 4, 256>}, {transform_indices = @transform_2, window_bounds = array<i64: 1, 1, 1, 1>}, {transform_indices = @transform_3, window_bounds = array<i64: 1, 1, 1, 1>}]} {
    %c0 = arith.constant 0 : index
    %c0_0 = arith.constant 0 : index
    %c0_1 = arith.constant 0 : index
    %0 = vector.load %arg2[%c0, %c0_0, %c0_1] : memref<1x4x256xf32, #tpu.memory_space<vmem>>, vector<1x4x256xf32>
    %1 = vector.shape_cast %0 : vector<1x4x256xf32> to vector<4x256xf32>
    %c0_2 = arith.constant 0 : index
    %c0_3 = arith.constant 0 : index
    %c0_4 = arith.constant 0 : index
    %2 = vector.load %arg3[%c0_2, %c0_3, %c0_4] : memref<1x4x256xf32, #tpu.memory_space<vmem>>, vector<1x4x256xf32>
    %3 = vector.shape_cast %2 : vector<1x4x256xf32> to vector<4x256xf32>
    %4 = arith.mulf %1, %3 : vector<4x256xf32>
    %cst = arith.constant dense<0.000000e+00> : vector<256xf32>
    %5 = vector.multi_reduction <add>, %4, %cst [0] : vector<4x256xf32> to vector<256xf32>
    %6 = vector.shape_cast %5 : vector<256xf32> to vector<1x256xf32>
    %7 = arith.mulf %1, %1 : vector<4x256xf32>
    %cst_5 = arith.constant dense<0.000000e+00> : vector<256xf32>
    %8 = vector.multi_reduction <add>, %7, %cst_5 [0] : vector<4x256xf32> to vector<256xf32>
    %9 = vector.shape_cast %8 : vector<256xf32> to vector<1x256xf32>
    %10 = arith.mulf %3, %3 : vector<4x256xf32>
    %cst_6 = arith.constant dense<0.000000e+00> : vector<256xf32>
    %11 = vector.multi_reduction <add>, %10, %cst_6 [0] : vector<4x256xf32> to vector<256xf32>
    %12 = vector.shape_cast %11 : vector<256xf32> to vector<1x256xf32>
    %13 = arith.mulf %9, %12 : vector<1x256xf32>
    %14 = math.sqrt %13 : vector<1x256xf32>
    %cst_7 = arith.constant 9.99999968E-21 : f32
    %15 = vector.broadcast %cst_7 : f32 to vector<1x256xf32>
    %16 = arith.maximumf %14, %15 : vector<1x256xf32>
    %17 = tpu.reciprocal %16 {approx = true} : vector<1x256xf32> -> vector<1x256xf32>
    %18 = arith.mulf %16, %17 : vector<1x256xf32>
    %cst_8 = arith.constant 2.000000e+00 : f32
    %19 = vector.broadcast %cst_8 : f32 to vector<1x256xf32>
    %20 = arith.subf %19, %18 : vector<1x256xf32>
    %21 = arith.mulf %17, %20 : vector<1x256xf32>
    %22 = arith.mulf %6, %21 : vector<1x256xf32>
    %23 = arith.subf %1, %3 : vector<4x256xf32>
    %24 = math.absf %23 : vector<4x256xf32>
    %25 = vector.shape_cast %24 : vector<4x256xf32> to vector<1x4x256xf32>
    %cst_9 = arith.constant dense<0.000000e+00> : vector<1xf32>
    %26 = vector.multi_reduction <add>, %25, %cst_9 [1, 2] : vector<1x4x256xf32> to vector<1xf32>
    %27 = vector.shape_cast %26 : vector<1xf32> to vector<1x1x1xf32>
    %28 = vector.extract %27[0, 0, 0] : f32 from vector<1x1x1xf32>
    %29 = vector.broadcast %28 : f32 to vector<1x1xf32>
    %cst_10 = arith.constant 1.000000e+00 : f32
    %30 = vector.broadcast %cst_10 : f32 to vector<1x256xf32>
    %31 = arith.subf %30, %22 : vector<1x256xf32>
    %32 = vector.shape_cast %31 : vector<1x256xf32> to vector<1x1x256xf32>
    %cst_11 = arith.constant dense<0.000000e+00> : vector<1xf32>
    %33 = vector.multi_reduction <add>, %32, %cst_11 [1, 2] : vector<1x1x256xf32> to vector<1xf32>
    %34 = vector.shape_cast %33 : vector<1xf32> to vector<1x1x1xf32>
    %35 = vector.extract %34[0, 0, 0] : f32 from vector<1x1x1xf32>
    %36 = vector.broadcast %35 : f32 to vector<1x1xf32>
    %37 = vector.shape_cast %29 : vector<1x1xf32> to vector<1x1x1x1xf32>
    %c0_12 = arith.constant 0 : index
    %c0_13 = arith.constant 0 : index
    %c0_14 = arith.constant 0 : index
    %c0_15 = arith.constant 0 : index
    %38 = vector.load %arg4[%c0_12, %c0_13, %c0_14, %c0_15] : memref<1x1x1x1xf32, #tpu.memory_space<vmem>>, vector<1x1x1x1xf32>
    tpu.vector_store %arg4[%c0_12, %c0_13, %c0_14, %c0_15], %37 {strides = array<i32>} : memref<1x1x1x1xf32, #tpu.memory_space<vmem>>, vector<1x1x1x1xf32>,
    %39 = vector.shape_cast %36 : vector<1x1xf32> to vector<1x1x1x1xf32>
    %c0_16 = arith.constant 0 : index
    %c0_17 = arith.constant 0 : index
    %c0_18 = arith.constant 0 : index
    %c0_19 = arith.constant 0 : index
    %40 = vector.load %arg5[%c0_16, %c0_17, %c0_18, %c0_19] : memref<1x1x1x1xf32, #tpu.memory_space<vmem>>, vector<1x1x1x1xf32>
    tpu.vector_store %arg5[%c0_16, %c0_17, %c0_18, %c0_19], %39 {strides = array<i32>} : memref<1x1x1x1xf32, #tpu.memory_space<vmem>>, vector<1x1x1x1xf32>,
    return
  }
  func.func @transform_0(%arg0: i32, %arg1: i32) -> (i32, i32, i32) {
    %c0_i32 = arith.constant 0 : i32
    %c0_i32_0 = arith.constant 0 : i32
    return %arg0, %c0_i32, %arg1 : i32, i32, i32
  }
  func.func @transform_1(%arg0: i32, %arg1: i32) -> (i32, i32, i32) {
    %c0_i32 = arith.constant 0 : i32
    %c0_i32_0 = arith.constant 0 : i32
    return %arg0, %c0_i32, %arg1 : i32, i32, i32
  }
  func.func @transform_2(%arg0: i32, %arg1: i32) -> (i32, i32, i32, i32) {
    %c0_i32 = arith.constant 0 : i32
    %c0_i32_0 = arith.constant 0 : i32
    %c0_i32_1 = arith.constant 0 : i32
    return %arg0, %arg1, %c0_i32, %c0_i32_0 : i32, i32, i32, i32
  }
  func.func @transform_3(%arg0: i32, %arg1: i32) -> (i32, i32, i32, i32) {
    %c0_i32 = arith.constant 0 : i32
    %c0_i32_0 = arith.constant 0 : i32
    %c0_i32_1 = arith.constant 0 : i32
    return %arg0, %arg1, %c0_i32, %c0_i32_0 : i32, i32, i32, i32
  }
}

</mosaic_0001>

<bundles_post_ra>
// kernel: tpu_custom_call.1
= control target key start
LH: loop header
LB: loop body
LE: loop exit
PB: predicated region body
PF: predicated region fallthrough
CT: control target
= control target key end

     0   :  { %9 = vsyncpa [#allocation3], 0  ;;  %s890_s0 = inlined_call_operand.hbm [shape: f32[2,4,256], index: 0, kind: input, shape index: {}]   ;;  %s891_s1 = inlined_call_operand.hbm [shape: f32[2,4,256], index: 1, kind: input, shape index: {}]   ;;  %s892_s2 = inlined_call_operand.vmem [shape: f32[2,1,1,1], index: 2, kind: output, shape index: {0}]   ;;  %s893_s3 = inlined_call_operand.vmem [shape: f32[2,1,1,1], index: 3, kind: output, shape index: {1}]  }
   0x1   :  { %11 = vsyncpa [#allocation3 + $0x1], 0 }
   0x2   :  { %12 = vsyncpa [#allocation5], 0 }
   0x3   :  { %14 = vsyncpa [#allocation5 + $0x1], 0  ;;  %s784_s12 = smov 0   ;;  %s786_s13 = smov 0  }
   0x4   :  { %s788_s14 = smov 0   ;;  %s790_s15 = smov 0  }
   0x5   :  { %s792_s16 = smov 0   ;;  %s794_s17 = smov 0  }
   0x6 LB: > { %s559_s18 = sadd.s32 4294967295, %s762_s17   ;;  %s32_s19 = sadd.s32 1, %s758_s16  ;;  %s762_s17 = sphi %s794_s17, %s20_s17   ;;  %s758_s16 = sphi %s792_s16, %s900_s16   ;;  %s754_s15 = sphi %s790_s15, %s899_s15   ;;  %s750_s14 = sphi %s788_s14, %s898_s14   ;;  %s746_s13 = sphi %s786_s13, %s897_s13   ;;  %s742_s12 = sphi %s784_s12, %s896_s12  }
   0x7   : > { %p34_p0 = scmp.ge.s32.totalorder %s32_s19, 2  ;;  %s41_s20 = sadd.s32 1, %s750_s14 }
   0x8   : > { %p48_p1 = scmp.ne.s32.totalorder %s750_s14, %s746_s13  ;;  %p49_p2 = scmp.eq.s32.totalorder %s762_s17, 0 }
   0x9   : > { %s902_s19 = smov (%p34_p0, %s32_s19), 0  ;;  %p54_p4 = scmp.ne.s32.totalorder %s746_s13, %s742_s12 }
   0xa   : > { %p820_p3 = por %p49_p2, %p48_p1  ;;  %s36_s22 = ssub.s32 %s758_s16, %s902_s19 }
   0xb   : > { %p55_p5 = scmp.eq.s32.totalorder %s559_s18, 0  ;;  %p39_p6 = scmp.eq.s32.totalorder %s36_s22, 0 }
   0xc   : > { %p591_p8 = scmp.lt.s32.totalorder %s762_s17, 2  ;;  %s162_s25 = sand.u32 1, %s750_s14  }
   0xd   : > { %p827_p7 = por %p55_p5, %p54_p4  ;;  %s574_s26 = sshll.u32 %s758_s16, 3 }
   0xe   : > { %s833_s24 = scalar_select %p39_p6, %s750_s14, %s41_s20  }
   0xf   : > { %s563_s27 = sshll.u32 %s162_s25, 3  ;;  %s173_s30 = scalar_lea.hbm %s890_s0, %s574_s26 }
  0x10   : > { %s175_s4 = sshll.u32 %s173_s30, 4  ;;  %s166_s5 = scalar_lea.vmem [#allocation2], %s563_s27  ;;  %s176_s4 = int_to_ptr.hbm [resolvable:$true] %s175_s4 }
  0x11   : > { %s177_s6 = sshll.u32 %s166_s5, 4  ;;  %p585_p9 = pnand %p591_p8, %p820_p3  ;;  %s178_s6 = int_to_ptr.vmem [resolvable:$true] %s177_s6 }
  0x12   : > { %p569_p10 = scmp.ge.s32.totalorder %s762_s17, 1  ;;  %p204_p11 = scmp.lt.s32.totalorder %s762_s17, 3 }
  0x13   : > { %s163_s7 = scalar_lea.sflag [#allocation3], %s162_s25  ;;  %s195_s10 = scalar_lea.hbm %s891_s1, %s574_s26 }
  0x14   : > { %587 = dma.hbm_to_vmem [thread:$0]  (!%p585_p9), %s176_s4, 128, %s178_s6, %s163_s7  }
  0x15   : > { %p205_p12 = pnand %p569_p10, %p204_p11  ;;  %s197_s11 = sshll.u32 %s195_s10, 4  ;;  %s198_s11 = int_to_ptr.hbm [resolvable:$true] %s197_s11 }
  0x16   : > { %s188_s12 = scalar_lea.vmem [#allocation4], %s563_s27  ;;  %s185_s20 = scalar_lea.sflag [#allocation5], %s162_s25 }
  0x17   : > { %s199_s18 = sshll.u32 %s188_s12, 4  ;;  %208 = sbr.rel (%p205_p12) target bundleno = 297 (0x129), region = 28  ;;  %s200_s18 = int_to_ptr.vmem [resolvable:$true] %s199_s18 }
  0x18   : > { %590 = dma.hbm_to_vmem [thread:$0]  (!%p585_p9), %s198_s11, 128, %s200_s18, %s185_s20  }
  0x19   : > { %s210_s21 = sand.u32 (!%p205_p12), 1, %s746_s13  }
  0x1a   : > { %s570_s22 = sshll.u32 (!%p205_p12), %s210_s21, 3  ;;  %s211_s28 = scalar_lea.sflag (!%p205_p12), [#allocation3], %s210_s21 }
  0x1b   : > { %s214_s29 = scalar_lea.vmem (!%p205_p12), [#allocation2], %s570_s22 }
  0x1c   : > { %733 = dma.done.wait (%p827_p7), %s211_s28, 128  }
  0x1d   : > { %735 = vsyncadd (%p827_p7), %s211_s28, 4294967168  ;;  %s221_s26 = scalar_lea.sflag [#allocation5], %s210_s21  ;;  %s224_s27 = scalar_lea.vmem [#allocation4], %s570_s22 }
  0x1e   : > { %737 = dma.done.wait (%p827_p7), %s221_s26, 128  }
  0x1f   : > { %739 = vsyncadd (%p827_p7), %s221_s26, 4294967168  ;;  %v274_v0 = vld [vmem:[%s214_s29] sm:$0xff]  ;;  %v275_v1 = vld [vmem:[%s224_s27] sm:$0xff]  ;;  %vm283_vm0 = vcmask 1043456   ;;  %vm400_vm5 = vcmask 1040384   ;;  %p262_p13 = scmp.lt.s32.totalorder %s754_s15, 1 }
  0x20   : > { %v276_v2 = vmul.f32 %v275_v1, %v274_v0  ;;  %v298_v3 = vmul.f32 %v274_v0, %v274_v0  ;;  %v319_v6 = vmul.f32 %v275_v1, %v275_v1  ;;  %v378_v9 = vsub.f32 %v274_v0, %v275_v1 }
  0x21   : > { %s904_s15 = smov (!%p262_p13, %s754_s15), 1  ;;  %vm414_vm6 = vcmask 0  }
  0x22   : > { %278 = vst [vmem:[#allocation1] ss:$2 sm:$0xff] %v276_v2  ;;  %v379_v16 = vand.u32 2147483647, %v378_v9  ;;  %s267_s30 = scalar_lea.vmem %s892_s2, %s904_s15  ;;  %s273_s7 = scalar_lea.vmem %s893_s3, %s904_s15 }
  0x29   : > { %v279_v4 = vld.sshfl [vmem:[#allocation1] sm:$0xff pattern:$0x75316420]  ;;  %v280_v5 = vld.sshfl [vmem:[#allocation1 + $0x8] sm:$0xff pattern:$0x75316420] }
  0x2a   : > { %300 = vst [vmem:[#allocation1] ss:$2 sm:$0xff] %v298_v3  ;;  %v284_v51 = vsel %vm283_vm0, %v279_v4, 0.0  ;;  %v291_v53 = vsel %vm283_vm0, %v280_v5, 0.0 }
  0x2b   : > { %v285_v56 = vrot.slane %v284_v51, 4  ;;  %v292_v58 = vrot.slane %v291_v53, 4 }
  0x2d   : > { %v286_v62 = vadd.f32 %v285_v56, %v284_v51  ;;  %v293_v0 = vadd.f32 %v292_v58, %v291_v53 }
  0x31   : > { %v301_v7 = vld.sshfl [vmem:[#allocation1] sm:$0xff pattern:$0x75316420]  ;;  %v302_v8 = vld.sshfl [vmem:[#allocation1 + $0x8] sm:$0xff pattern:$0x75316420] }
  0x32   : > { %v312_v10 = vsel %vm283_vm0, %v302_v8, 0.0  ;;  %321 = vst [vmem:[#allocation1] ss:$2 sm:$0xff] %v319_v6  ;;  %v305_v11 = vsel %vm283_vm0, %v301_v7, 0.0  ;;  %v287_v7 = vrot.slane %v286_v62, 2 }
  0x33   : > { %v313_v12 = vrot.slane %v312_v10, 4  ;;  %v306_v13 = vrot.slane %v305_v11, 4 }
  0x35   : > { %v314_v14 = vadd.f32 %v313_v12, %v312_v10  ;;  %v307_v15 = vadd.f32 %v306_v13, %v305_v11  ;;  %v294_v10 = vrot.slane %v293_v0, 2 }
  0x37   : > { %v315_v17 = vrot.slane %v314_v14, 2  ;;  %v308_v18 = vrot.slane %v307_v15, 2 }
  0x39   : > { %v322_v19 = vld.sshfl [vmem:[#allocation1] sm:$0xff pattern:$0x75316420]  ;;  %v323_v20 = vld.sshfl [vmem:[#allocation1 + $0x8] sm:$0xff pattern:$0x75316420]  ;;  %v316_v21 = vadd.f32 %v315_v17, %v314_v14  ;;  %v309_v25 = vadd.f32 %v308_v18, %v307_v15  ;;  %v288_v14 = vadd.f32 %v287_v7, %v286_v62  ;;  %v295_v15 = vadd.f32 %v294_v10, %v293_v0 }
  0x3a   : > { %v333_v22 = vsel %vm283_vm0, %v323_v20, 0.0  ;;  %381 = vst [vmem:[#allocation1] ss:$2 sm:$0xff] %v379_v16  ;;  %v326_v23 = vsel %vm283_vm0, %v322_v19, 0.0 }
  0x3b   : > { %v334_v24 = vrot.slane %v333_v22, 4  ;;  %v327_v26 = vrot.slane %v326_v23, 4  ;;  %v317_v29 = vrot.slane %v316_v21, 1  ;;  %v310_v31 = vrot.slane %v309_v25, 1 }
  0x3c   : > { %v289_v16 = vrot.slane %v288_v14, 1  ;;  %v296_v18 = vrot.slane %v295_v15, 1 }
  0x3d   : > { %v335_v27 = vadd.f32 %v334_v24, %v333_v22  ;;  %v328_v28 = vadd.f32 %v327_v26, %v326_v23  ;;  %v318_v37 = vadd.f32 %v317_v29, %v316_v21  ;;  %v311_v42 = vadd.f32 %v310_v31, %v309_v25 }
  0x3e   : > { %v290_v22 = vadd.f32 %v289_v16, %v288_v14  ;;  %v297_v24 = vadd.f32 %v296_v18, %v295_v15 }
  0x3f   : > { %v336_v30 = vrot.slane %v335_v27, 2  ;;  %v329_v32 = vrot.slane %v328_v28, 2 }
  0x41   : > { %v337_v33 = vadd.f32 %v336_v30, %v335_v27  ;;  %v382_v34 = vld.sshfl [vmem:[#allocation1] sm:$0xff pattern:$0x75316420]  ;;  %v383_v35 = vld.sshfl [vmem:[#allocation1 + $0x8] sm:$0xff pattern:$0x75316420]  ;;  %v330_v36 = vadd.f32 %v329_v32, %v328_v28 }
  0x42   : > { %v386_v38 = vsel %vm283_vm0, %v382_v34, 0.0  ;;  %v387_v39 = vsel %vm283_vm0, %v383_v35, 0.0 }
  0x43   : > { %v338_v40 = vrot.slane %v337_v33, 1  ;;  %v388_v41 = vadd.f32 %v387_v39, %v386_v38  ;;  %v331_v43 = vrot.slane %v330_v36, 1 }
  0x45   : > { %v339_v44 = vadd.f32 %v338_v40, %v337_v33  ;;  %389 = vadd.xlane.f32.xlu0 %v388_v41  ;;  %v332_v45 = vadd.f32 %v331_v43, %v330_v36 }
  0x47   : > { %v340_v46 = vmul.f32 %v332_v45, %v311_v42  ;;  %v341_v47 = vmul.f32 %v339_v44, %v318_v37 }
  0x49   : > { %640 = vrsqrt.f32 %v340_v46  ;;  %vm349_vm1 = vcmp.eq.f32.partialorder %v340_v46, inf  ;;  %v352_v1 = vand.u32 2147483648, %v340_v46  ;;  %vm351_vm2 = vcmp.eq.f32.partialorder %v340_v46, 0.0 }
  0x4a   : > { %642 = vrsqrt.f32 %v341_v47  ;;  %vm361_vm3 = vcmp.eq.f32.partialorder %v341_v47, inf  ;;  %v364_v4 = vand.u32 2147483648, %v341_v47  ;;  %vm363_vm4 = vcmp.eq.f32.partialorder %v341_v47, 0.0 }
  0x4f   : > { %v641_v48 = vpop.eup %640 }
  0x50   : > { %v643_v49 = vpop.eup %642  ;;  %v343_v50 = vmul.f32 %v641_v48, %v340_v46 }
  0x51   : > { %v355_v52 = vmul.f32 %v643_v49, %v341_v47 }
  0x52   : > { %v344_v54 = vmul.f32 %v641_v48, %v343_v50 }
  0x53   : > { %v356_v55 = vmul.f32 %v643_v49, %v355_v52 }
  0x54   : > { %v345_v57 = vmul.f32 0.5, %v344_v54 }
  0x55   : > { %v357_v59 = vmul.f32 0.5, %v356_v55 }
  0x56   : > { %v346_v60 = vsub.f32 1.5, %v345_v57 }
  0x57   : > { %v358_v61 = vsub.f32 1.5, %v357_v59 }
  0x58   : > { %v347_v63 = vmul.f32 %v641_v48, %v346_v60 }
  0x59   : > { %v359_v2 = vmul.f32 %v643_v49, %v358_v61 }
  0x5a   : > { %v348_v3 = vmul.f32 %v347_v63, %v340_v46 }
  0x5b   : > { %v360_v6 = vmul.f32 %v359_v2, %v341_v47 }
  0x5c   : > { %v350_v5 = vsel %vm349_vm1, %v340_v46, %v348_v3 }
  0x5d   : > { %v353_v8 = vsel %vm351_vm2, %v352_v1, %v350_v5  ;;  %v362_v9 = vsel %vm361_vm3, %v341_v47, %v360_v6 }
  0x5e   : > { %v365_v11 = vsel %vm363_vm4, %v364_v4, %v362_v9  ;;  %v366_v12 = vmax.f32 %v353_v8, 1e-20 }
  0x5f   : > { %v367_v13 = vmax.f32 %v365_v11, 1e-20 }
  0x60   : > { %644 = vrcp.f32 %v366_v12 }
  0x61   : > { %646 = vrcp.f32 %v367_v13 }
  0x66   : > { %v645_v17 = vpop.eup %644 }
  0x67   : > { %v647_v19 = vpop.eup %646  ;;  %v370_v20 = vmul.f32 %v645_v17, %v366_v12 }
  0x68   : > { %v371_v21 = vmul.f32 %v647_v19, %v367_v13 }
  0x69   : > { %v372_v23 = vsub.f32 2.0, %v370_v20 }
  0x6a   : > { %v373_v25 = vsub.f32 2.0, %v371_v21 }
  0x6b   : > { %v374_v26 = vmul.f32 %v645_v17, %v372_v23 }
  0x6c   : > { %v375_v27 = vmul.f32 %v647_v19, %v373_v25 }
  0x6d   : > { %v376_v28 = vmul.f32 %v374_v26, %v290_v22 }
  0x6e   : > { %v377_v29 = vmul.f32 %v375_v27, %v297_v24 }
  0x6f   : > { %v398_v30 = vsub.f32 1.0, %v376_v28 }
  0x70   : > { %v399_v31 = vsub.f32 1.0, %v377_v29 }
  0x71   : > { %v401_v32 = vsel %vm400_vm5, %v398_v30, 0.0 }
  0x72   : > { %v402_v33 = vsel %vm400_vm5, %v399_v31, 0.0 }
  0x73   : > { %v403_v34 = vadd.f32 %v402_v33, %v401_v32 }
  0x75   : > { %404 = vadd.xlane.f32.xlu0 %v403_v34 }
  0xb8   : > { %v390_v35 = vpop.xlane.xlu0 %389 }
  0xb9   : > { %v391_v36 = vrot.slane %v390_v35, 4 }
  0xbb   : > { %v392_v37 = vadd.f32 %v391_v36, %v390_v35 }
  0xbd   : > { %v393_v38 = vrot.slane %v392_v37, 2 }
  0xbf   : > { %v394_v39 = vadd.f32 %v393_v38, %v392_v37 }
  0xc1   : > { %v395_v40 = vrot.slane %v394_v39, 1 }
  0xc3   : > { %v396_v41 = vadd.f32 %v395_v40, %v394_v39 }
  0xc5   : > { %576 = vpush %v396_v41 }
  0xe8   : > { %v405_v42 = vpop.xlane.xlu0 %404 }
  0xe9   : > { %v406_v43 = vrot.slane %v405_v42, 4 }
  0xeb   : > { %v407_v44 = vadd.f32 %v406_v43, %v405_v42 }
  0xed   : > { %v408_v45 = vrot.slane %v407_v44, 2 }
  0xef   : > { %v409_v46 = vadd.f32 %v408_v45, %v407_v44 }
  0xf1   : > { %v410_v47 = vrot.slane %v409_v46, 1 }
  0xf3   : > { %v411_v48 = vadd.f32 %v410_v47, %v409_v46 }
  0xf5   : > { %578 = vpush %v411_v48 }
  0xf6   : > { %s577_s4 = spop %576 }
  0xf7   : > { %v413_v49 = vstv %s577_s4 }
  0xf8   : > { %415 = vst.msk [vmem:[%s267_s30] sm:$0x1] %vm414_vm6, %v413_v49 }
 0x126   : > { %s579_s8 = spop %578 }
 0x127   : > { %v416_v50 = vstv %s579_s8 }
 0x128   : > { %417 = vst.msk [vmem:[%s273_s7] sm:$0x1] %vm414_vm6, %v416_v50 }
 0x129 PF: > { %s20_s17 = sadd.s32 1, %s762_s17   ;;  %s896_s12 = smov %s746_s13 }
 0x12a   : > { %p17_p0 = scmp.ge.s32.totalorder %s20_s17, 4   ;;  %s897_s13 = smov %s750_s14 }
 0x12b   : > { %s898_s14 = smov %s833_s24  ;;  %s899_s15 = smov %s758_s16 }
 0x12c   : > { %s900_s16 = smov %s902_s19  ;;  %19 = sbr.rel (!%p17_p0) target bundleno = 6 (0x6), region = 93 }
 0x131   :  { %459 = vsyncpa [#allocation3], 1 }
 0x132   :  { %461 = vsyncpa [#allocation3 + $0x1], 1 }
 0x133   :  { %462 = vsyncpa [#allocation5], 1 }
 0x134   :  { %464 = vsyncpa [#allocation5 + $0x1], 1 }

</bundles_post_ra>
